<compile_context>
chip_gen: v6e
topology: v6e:2x2x1
jax: 0.10.0
libtpu: 0.0.40
codegen_flags: <defaults>
</compile_context>

<pallas_src>
import functools

import jax
import jax.numpy as jnp
from jax import lax
from jax.experimental import pallas as pl
from jax.experimental.pallas import tpu as pltpu


# ----------------------------------------------------------------------------
# Helpers.
# ----------------------------------------------------------------------------
def _round_up(x, m):
    return ((x + m - 1) // m) * m


@functools.lru_cache(maxsize=None)
def _vmem_capacity_bytes():
    """Trace-time VMEM capacity query; conservative (v7x) fallback."""
    try:
        info = pltpu.get_tpu_info()
        cap = int(getattr(info, "vmem_capacity_bytes", 0) or 0)
        if cap > 0:
            return cap
    except Exception:
        pass
    return 64 * 1024 * 1024


# ----------------------------------------------------------------------------
# Path 1: VMEM-resident table + one-hot MXU gather (small vocabularies).
# ----------------------------------------------------------------------------
def _resident_onehot_kernel(ids_ref, w_ref, out_ref):
    ids = ids_ref[...]                                   # (T, 1) int32 column
    T = ids.shape[0]
    V = w_ref.shape[0]
    # One-hot built in the table dtype; ids >= V would silently yield a zero
    # row (torch would raise) — callers are expected to pass valid ids.
    onehot = (ids == lax.broadcasted_iota(jnp.int32, (T, V), 1)).astype(w_ref.dtype)
    # HIGHEST precision keeps f32 tables (near-)bit-exact through the MXU;
    # default TPU matmul precision truncates f32 operands to bf16.
    out_ref[...] = jnp.dot(
        onehot, w_ref[...],
        preferred_element_type=jnp.float32,
        precision=lax.Precision.HIGHEST,
    ).astype(out_ref.dtype)


def _resident_gather(flat_ids, w, T, n_tiles):
    N_pad = n_tiles * T
    V, D = w.shape
    itemsize = w.dtype.itemsize
    ids_col = flat_ids.reshape(N_pad, 1)
    flops = 2 * N_pad * V * D
    bytes_accessed = (V * D + 2 * N_pad * D) * itemsize + N_pad * 4
    vmem_limit = min(_vmem_capacity_bytes() // 2, 128 * 1024 * 1024)

    return pl.pallas_call(
        _resident_onehot_kernel,
        out_shape=jax.ShapeDtypeStruct((N_pad, D), w.dtype),
        grid_spec=pltpu.PrefetchScalarGridSpec(
            num_scalar_prefetch=0,
            grid=(n_tiles,),
            in_specs=[
                # (T, 1) id column: sublane dim T (multiple of 8), full lane extent.
                pl.BlockSpec((T, 1), lambda i: (i, 0)),
                # Full table, constant block index -> fetched into VMEM once.
                # Single-buffered: double-buffering a never-changing block only
                # doubles its VMEM footprint.
                pl.BlockSpec((V, D), lambda i: (0, 0), pipeline_mode=pl.Buffered(1)),
            ],
            out_specs=pl.BlockSpec((T, D), lambda i: (i, 0)),
        ),
        compiler_params=pltpu.CompilerParams(
            # No carried state across token tiles -> shard across TCs on v7x.
            dimension_semantics=("parallel",),
            vmem_limit_bytes=vmem_limit,
        ),
        cost_estimate=pl.CostEstimate(
            flops=flops, transcendentals=0, bytes_accessed=bytes_accessed
        ),
    )(ids_col, w)


# ----------------------------------------------------------------------------
# Path 2: table stays in HBM; rows are gathered with direct HBM->HBM row DMAs
# (no VMEM staging), one coalesced wait per tile, depth-2 pipeline.
# ----------------------------------------------------------------------------
def _make_dma_gather_kernel(T, n_tiles):
    def kernel(ids_ref, w_hbm, out_hbm, sem):
        i = pl.program_id(0)
        slot = i & 1

        def issue(slot_i):
            base = i * T
            for t in range(T):                 # T concurrent HBM->HBM row DMAs
                tok = ids_ref[base + t]        # token id from SMEM prefetch
                pltpu.make_async_copy(
                    w_hbm.at[tok], out_hbm.at[base + t], sem.at[slot_i]
                ).start()

        def retire(slot_i):
            # Size-only wait descriptor: DMA semaphores count bytes, so one
            # (T, D)-sized wait absorbs all T row completions of a tile
            # (replaces T scalar waits).  The refs here are never copied.
            sized = out_hbm.at[pl.ds(0, T)]
            pltpu.make_async_copy(sized, sized, sem.at[slot_i]).wait()

        # Retire the tile issued two steps ago (same slot) before reusing it,
        # keeping two tiles' worth of row DMAs in flight.
        if n_tiles > 2:
            @pl.when(i >= 2)
            def _():
                retire(slot)

        issue(slot)

        # Drain everything on the final grid step so the kernel only returns
        # once all gathered rows have landed in the output.
        is_last = i == n_tiles - 1
        if n_tiles >= 2:
            @pl.when(is_last)
            def _():
                retire(1 - slot)

        @pl.when(is_last)
        def _():
            retire(slot)

    return kernel


def _dma_gather(flat_ids, w, T, n_tiles):
    N_pad = n_tiles * T
    V, D = w.shape
    itemsize = w.dtype.itemsize
    bytes_accessed = 2 * N_pad * D * itemsize + N_pad * 4

    return pl.pallas_call(
        _make_dma_gather_kernel(T, n_tiles),
        out_shape=jax.ShapeDtypeStruct((N_pad, D), w.dtype),
        grid_spec=pltpu.PrefetchScalarGridSpec(
            num_scalar_prefetch=1,                          # flat ids -> SMEM
            grid=(n_tiles,),
            in_specs=[pl.BlockSpec(memory_space=pl.ANY)],   # table stays in HBM
            out_specs=pl.BlockSpec(memory_space=pl.ANY),    # gather lands in HBM
            scratch_shapes=[pltpu.SemaphoreType.DMA((2,))],
        ),
        compiler_params=pltpu.CompilerParams(
            # Semaphore state is carried across steps -> sequential axis.
            # TODO(synk): on v7x, split token tiles across both TensorCores
            # (leading core axis / pl.core_map) to double descriptor issue rate.
            dimension_semantics=("arbitrary",),
        ),
        cost_estimate=pl.CostEstimate(
            flops=0, transcendentals=0, bytes_accessed=bytes_accessed
        ),
    )(flat_ids, w)


# ----------------------------------------------------------------------------
# Wrapper: path selection, tiling, padding, reshape.
# ----------------------------------------------------------------------------
def prepare_embedding_table(wv_weight):
    """Lane-pad the embedding dim to a multiple of 128.

    Call once per parameter update (not per forward) so the forward never
    re-copies the full table in HBM just to pad it.
    """
    V, D = wv_weight.shape
    D_pad = _round_up(D, 128)
    if D_pad != D:
        wv_weight = jnp.pad(wv_weight, ((0, 0), (0, D_pad - D)))
    return wv_weight


def update_trainable_rows(wv_weight, trainable_rows, num_fixed):
    """Mirror `wv_weight[num_fixed:] = trainable` from the torch forward.

    Only the trainable slice is rewritten (dynamic_update_slice); under jit
    with donation this is an in-place slice update, not a full-table rewrite.
    """
    return lax.dynamic_update_slice(
        wv_weight, trainable_rows.astype(wv_weight.dtype), (num_fixed, 0)
    )


@functools.partial(jax.jit, static_argnames=("block_tokens", "force_dma_gather"))
def word_embedding_forward(inputs, wv_weight, *, block_tokens=256,
                           force_dma_gather=False):
    """inputs: (B, S) int token ids; wv_weight: (V, D). Returns (B, S, D)."""
    B, S = inputs.shape
    V, D = wv_weight.shape
    N = B * S
    itemsize = wv_weight.dtype.itemsize

    # Lane-pad only if the caller did not pre-pad via prepare_embedding_table
    # (that per-call pad rewrites the whole table in HBM; avoid it when hot).
    D_pad = _round_up(D, 128)
    if D_pad != D:
        wv_weight = jnp.pad(wv_weight, ((0, 0), (0, D_pad - D)))

    # Generation-aware path choice: keep the table VMEM-resident (one-hot MXU
    # gather) only while it takes <= 1/8 of this chip's VMEM (16 MiB on
    # v5e/v6e, 8 MiB on v7x); otherwise gather rows straight out of HBM.
    vmem_cap = _vmem_capacity_bytes()
    table_bytes = V * D_pad * itemsize
    use_resident = (
        (not force_dma_gather) and V <= 8192 and table_bytes <= vmem_cap // 8
    )

    # Tokens per grid step: a multiple of the sublane count (dense stores),
    # large (default 256) to fill the MXU M dim / amortize per-step overhead,
    # but never larger than the rounded-up token count.
    sublane = 16 if wv_weight.dtype == jnp.bfloat16 else 8
    T = max(sublane, (block_tokens // sublane) * sublane)
    T = min(T, _round_up(N, sublane))
    if use_resident:
        # Cap the (T, V) one-hot intermediate at ~4 MiB of VMEM.
        onehot_cap = (4 * 1024 * 1024 // max(V * itemsize, 1)) // sublane * sublane
        T = min(T, max(sublane, onehot_cap))
    n_tiles = -(-N // T)
    N_pad = n_tiles * T

    flat_ids = inputs.reshape(N).astype(jnp.int32)
    if N_pad != N:
        flat_ids = jnp.pad(flat_ids, (0, N_pad - N))     # pad with id 0 (valid row)

    # TODO(synk): for very long B*S, chunk flat_ids per tile instead of
    # scalar-prefetching them all into SMEM (1-D SMEM pads to next_pow2(4N) B).
    if use_resident:
        out_flat = _resident_gather(flat_ids, wv_weight, T, n_tiles)
    else:
        out_flat = _dma_gather(flat_ids, wv_weight, T, n_tiles)

    return out_flat[:N, :D].reshape(B, S, D)


# ----------------------------------------------------------------------------
# Demo / self-test.
# ----------------------------------------------------------------------------
if __name__ == "__main__":
    key = jax.random.PRNGKey(0)
    k_fixed, k_train, k_idx, k_idx2 = jax.random.split(key, 4)

    num_fixed, num_trainable, wv_dim = 12, 4, 128
    vocab = num_fixed + num_trainable
    B, S = 2, 8

    # Fixed (pretrained) rows + xavier-uniform trainable rows, as in __init__.
    fixed = jax.random.normal(k_fixed, (num_fixed, wv_dim), jnp.float32)
    bound = (6.0 / (num_trainable + wv_dim)) ** 0.5
    trainable = jax.random.uniform(
        k_train, (num_trainable, wv_dim), jnp.float32, -bound, bound
    )

    wv_weight = jnp.zeros((vocab, wv_dim), jnp.float32)
    wv_weight = wv_weight.at[:num_fixed].set(fixed)
    # Per-forward refresh of the trainable rows (slice update, not concat).
    wv_weight = update_trainable_rows(wv_weight, trainable, num_fixed)
    # Lane-pad once, outside the forward (no-op here since wv_dim == 128).
    wv_weight = prepare_embedding_table(wv_weight)

    inputs = jax.random.randint(k_idx, (B, S), 0, vocab, jnp.int32)
    ref = jnp.take(wv_weight, inputs, axis=0)

    # Path 1: VMEM-resident table + one-hot MXU gather (chosen automatically).
    out_resident = jax.block_until_ready(word_embedding_forward(inputs, wv_weight))
    assert out_resident.shape == (B, S, wv_dim), out_resident.shape
    assert jnp.allclose(out_resident, ref, rtol=1e-5, atol=1e-5), \
        "resident-table gather mismatch"

    # Path 2: HBM->HBM row-DMA gather (big-vocab path), forced for testing.
    out_dma = jax.block_until_ready(
        word_embedding_forward(inputs, wv_weight, block_tokens=8,
                               force_dma_gather=True)
    )
    assert out_dma.shape == (B, S, wv_dim), out_dma.shape
    assert jnp.array_equal(out_dma, ref), "row-DMA gather mismatch"

    # Multi-tile stress: exercises the steady-state (i >= 2) retire of the DMA
    # pipeline and multi-tile resident gathers.
    B2, S2 = 2, 40
    inputs2 = jax.random.randint(k_idx2, (B2, S2), 0, vocab, jnp.int32)
    ref2 = jnp.take(wv_weight, inputs2, axis=0)

    out2_res = jax.block_until_ready(
        word_embedding_forward(inputs2, wv_weight, block_tokens=16)
    )
    assert jnp.allclose(out2_res, ref2, rtol=1e-5, atol=1e-5), \
        "multi-tile resident gather mismatch"

    out2_dma = jax.block_until_ready(
        word_embedding_forward(inputs2, wv_weight, block_tokens=8,
                               force_dma_gather=True)
    )
    assert jnp.array_equal(out2_dma, ref2), "multi-tile row-DMA gather mismatch"

    print("KERNEL_OK")
</pallas_src>

<mosaic_0001>
module attributes {stable_mosaic.version = 11 : i64} {
  func.func @_resident_onehot_kernel(%arg0: i32, %arg1: memref<16x1xi32, #tpu.memory_space<vmem>>, %arg2: memref<16x128xf32, #tpu.memory_space<vmem>>, %arg3: memref<16x128xf32, #tpu.memory_space<vmem>>) attributes {dimension_semantics = [#tpu.dimension_semantics<parallel>], iteration_bounds = array<i64: 1>, scalar_prefetch = 0 : i64, scratch_operands = 0 : i64, tpu.core_type = #tpu.core_type<tc>, window_params = [{transform_indices = @transform_0, window_bounds = array<i64: 16, 1>}, {pipeline_mode = #tpu.pipeline_mode<synchronous>, transform_indices = @transform_1, window_bounds = array<i64: 16, 128>}, {transform_indices = @transform_2, window_bounds = array<i64: 16, 128>}]} {
    %c0 = arith.constant 0 : index
    %c0_0 = arith.constant 0 : index
    %0 = vector.load %arg1[%c0, %c0_0] : memref<16x1xi32, #tpu.memory_space<vmem>>, vector<16x1xi32>
    %1 = tpu.iota {dimensions = array<i32: 1>} : vector<16x16xi32>
    %2 = vector.broadcast %0 : vector<16x1xi32> to vector<16x16xi32>
    %3 = arith.cmpi eq, %2, %1 : vector<16x16xi32>
    %4 = arith.extui %3 : vector<16x16xi1> to vector<16x16xi32>
    %5 = arith.sitofp %4 : vector<16x16xi32> to vector<16x16xf32>
    %c0_1 = arith.constant 0 : index
    %c0_2 = arith.constant 0 : index
    %6 = vector.load %arg2[%c0_1, %c0_2] : memref<16x128xf32, #tpu.memory_space<vmem>>, vector<16x128xf32>
    %cst = arith.constant dense<0.000000e+00> : vector<16x128xf32>
    %7 = tpu.matmul %5, %6, %cst {dimension_numbers = #tpu.dot_dimension_numbers<[1], [0], [0], [1], [0, 0, 1, 1], [], []>, precision = #tpu.contract_precision<fp32>} : vector<16x16xf32>, vector<16x128xf32>, vector<16x128xf32> -> vector<16x128xf32>
    %c0_3 = arith.constant 0 : index
    %c0_4 = arith.constant 0 : index
    %8 = vector.load %arg3[%c0_3, %c0_4] : memref<16x128xf32, #tpu.memory_space<vmem>>, vector<16x128xf32>
    tpu.vector_store %arg3[%c0_3, %c0_4], %7 {strides = array<i32>} : memref<16x128xf32, #tpu.memory_space<vmem>>, vector<16x128xf32>,
    return
  }
  func.func @transform_0(%arg0: i32) -> (i32, i32) {
    %c0_i32 = arith.constant 0 : i32
    %c0_i32_0 = arith.constant 0 : i32
    return %arg0, %c0_i32 : i32, i32
  }
  func.func @transform_1(%arg0: i32) -> (i32, i32) {
    %c0_i32 = arith.constant 0 : i32
    %c0_i32_0 = arith.constant 0 : i32
    %c0_i32_1 = arith.constant 0 : i32
    return %c0_i32, %c0_i32_0 : i32, i32
  }
  func.func @transform_2(%arg0: i32) -> (i32, i32) {
    %c0_i32 = arith.constant 0 : i32
    %c0_i32_0 = arith.constant 0 : i32
    return %arg0, %c0_i32 : i32, i32
  }
}

</mosaic_0001>

<bundles_post_ra>
// kernel: word_embedding_forward.1
= control target key start
LH: loop header
LB: loop body
LE: loop exit
PB: predicated region body
PF: predicated region fallthrough
CT: control target
= control target key end

     0   :  { %v659_v2 = vmov 0   ;;  %s702_s0 = inlined_call_operand.vmem [shape: s32[16,1], index: 0, kind: input, shape index: {}]   ;;  %s703_s1 = inlined_call_operand.vmem [shape: f32[16,128], index: 1, kind: input, shape index: {}]   ;;  %s704_s2 = inlined_call_operand.hbm [shape: f32[16,128], index: 2, kind: output, shape index: {}]  }
   0x1   :  { %v12_v0 = vld [vmem:[%s702_s0] sm:$0xff]  ;;  %v29_v1 = vld [vmem:[%s703_s1 + $0x8] sm:$0xff]  ;;  %636 = vset.pattern.permute.xlu0 %v659_v2 }
   0x2   :  { %v66_v3 = vand.u32 4294901760, %v29_v1  ;;  %v28_v4 = vld [vmem:[%s703_s1] sm:$0xff] }
   0x3   :  { %7 = vsyncpa [#allocation3], 0  ;;  %17 = vperm.xlu0 %636, %v12_v0   ;;  %v69_v5 = vand.u32 4294901760, %v28_v4  ;;  %v13_v6 = vld [vmem:[%s702_s0 + $0x8] sm:$0xff]  ;;  %v14_v15 = vlaneseq  ;;  %vm30_vm0 = vcmask 130048   ;;  %v660_v18 = vmov 0.0  }
   0x4   :  { %v154_v7 = vsub.f32 %v29_v1, %v66_v3  ;;  %589 = vmatprep.subr.mxu0 %v66_v3  ;;  %s661_s0 = smov [#allocation2]  }
   0x5   :  { %v161_v8 = vsub.f32 %v28_v4, %v69_v5  ;;  %590 = vmatpush3.msra.mxu0 %v66_v3  ;;  %v15_v16 = vand.u32 127, %v14_v15  ;;  %s546_s1 = sshll.u32 %s661_s0, 4  ;;  %s547_s1 = int_to_ptr.vmem [resolvable:$true] %s546_s1 }
   0x6   :  { %v155_v9 = vand.u32 4294901760, %v154_v7  ;;  %591 = vmatprep.subr.mxu0 %v69_v5  ;;  %s637_s17 = scalar_lea.vmem %s547_s1, 256  ;;  %p642_p1 = scmp.lt.s32.totalorder %s547_s1, %s547_s1 }
   0x7   :  { %20 = vperm.xlu0 %636, %v13_v6   ;;  %v162_v10 = vand.u32 4294901760, %v161_v8  ;;  %592 = vmatpush3.msra.mxu0 %v69_v5  ;;  %p638_p0 = scmp.ne.s32.totalorder %s547_s1, %s637_s17  ;;  %p643_p2 = scmp.lt.s32.totalorder %s637_s17, %s637_s17 }
   0x8   :  { %v156_v11 = vsub.f32 %v154_v7, %v155_v9  ;;  %603 = vmatprep.subr.mxu0 %v154_v7 }
   0x9   :  { %v163_v12 = vsub.f32 %v161_v8, %v162_v10  ;;  %p644_p3 = por %p643_p2, %p642_p1 }
   0xa   :  { %v157_v13 = vand.u32 4294901760, %v156_v11 }
   0xb   :  { %v164_v14 = vand.u32 4294901760, %v163_v12  ;;  %p645_p4 = pnand %p644_p3, %p638_p0 }
   0xc   :  { %596 = vmatprep.subr.mxu1 %v157_v13 }
   0xd   :  { %597 = vmatpush3.msra.mxu1 %v157_v13 }
   0xe   :  { %598 = vmatprep.subr.mxu1 %v164_v14 }
   0xf   :  { %599 = vmatpush3.msra.mxu1 %v164_v14 }
  0x10   :  { %610 = vmatprep.subr.mxu1 %v66_v3 }
  0x7e   :  { %v18_v17 = vpop.permute.xlu0 %17 }
  0x7f   :  { %vm22_vm1 = vcmp.eq.s32.totalorder %v18_v17, %v15_v16 }
  0x80   :  { %v557_v19 = vsel %vm22_vm1, 1.0, %v660_v18 }
  0x81   :  { %v32_v20 = vsel %vm30_vm0, %v557_v19, 0  ;;  %600 = vmatprep.mubr.msk.f32.mxu1 %vm30_vm0, %v557_v19 }
  0x82   :  { %v105_v21 = vsub.f32 %v32_v20, %v32_v20  ;;  %v21_v22 = vpop.permute.xlu0 %20 }
  0x83   :  { %vm23_vm2 = vcmp.eq.s32.totalorder %v21_v22, %v15_v16 }
  0x84   :  { %v558_v23 = vsel %vm23_vm2, 1.0, %v660_v18  ;;  %v106_v24 = vand.u32 4294901760, %v105_v21 }
  0x85   :  { %v35_v25 = vsel %vm30_vm0, %v558_v23, 0  ;;  %601 = vmatmul.mubr.msk.f32.vlgmr.msra.gmra.mxu1 %vm30_vm0, %v558_v23 }
  0x86   :  { %v115_v26 = vsub.f32 %v35_v25, %v35_v25  ;;  %614 = vmatprep.mubr.f32.mxu1 %v106_v24  ;;  %611 = vmatpush3.msra.mxu1 %v66_v3  ;;  %v107_v27 = vsub.f32 %v105_v21, %v106_v24 }
  0x87   :  { %612 = vmatprep.subr.mxu1 %v69_v5 }
  0x88   :  { %613 = vmatpush3.msra.mxu1 %v69_v5  ;;  %v108_v28 = vand.u32 4294901760, %v107_v27  ;;  %v116_v29 = vand.u32 4294901760, %v115_v26 }
  0x89   :  { %624 = vmatprep.subr.mxu1 %v66_v3 }
  0x8a   :  { %593 = vmatprep.mubr.f32.mxu0 %v108_v28  ;;  %615 = vmatmul.mubr.f32.vlgmr.msra.gmra.mxu1 %v116_v29  ;;  %v117_v30 = vsub.f32 %v115_v26, %v116_v29 }
  0x8b   :  { %625 = vmatpush3.msra.mxu1 %v66_v3  ;;  %628 = vmatprep.mubr.msk.f32.mxu1 %vm30_vm0, %v557_v19 }
  0x8c   :  { %626 = vmatprep.subr.mxu1 %v69_v5  ;;  %v118_v31 = vand.u32 4294901760, %v117_v30 }
  0x8d   :  { %627 = vmatpush3.msra.mxu1 %v69_v5 }
  0x8e   :  { %594 = vmatmul.mubr.f32.vlgmr.msra.gmra.mxu0 %v118_v31  ;;  %629 = vmatmul.mubr.msk.f32.vlgmr.msra.gmra.mxu1 %vm30_vm0, %v558_v23 }
  0x8f   :  { %604 = vmatpush3.msra.mxu0 %v154_v7  ;;  %607 = vmatprep.mubr.f32.mxu0 %v105_v21 }
  0x90   :  { %605 = vmatprep.subr.mxu0 %v161_v8 }
  0x91   :  { %606 = vmatpush3.msra.mxu0 %v161_v8 }
  0x92   :  { %617 = vmatprep.subr.mxu0 %v155_v9  ;;  %608 = vmatmul.mubr.f32.vlgmr.msra.gmra.mxu0 %v115_v26 }
  0x93   :  { %618 = vmatpush3.msra.mxu0 %v155_v9  ;;  %621 = vmatprep.mubr.msk.f32.mxu0 %vm30_vm0, %v557_v19 }
  0x94   :  { %619 = vmatprep.subr.mxu0 %v162_v10 }
  0x95   :  { %620 = vmatpush3.msra.mxu0 %v162_v10 }
  0x96   :  { %622 = vmatmul.mubr.msk.f32.vlgmr.msra.gmra.mxu0 %vm30_vm0, %v558_v23 }
 0x145   :  { %v602_v32 = vpop.f32.mrf.mxu1 }
 0x147   :  { %v201_v33 = vpop.f32.mrf.mxu1 }
 0x14a   :  { %v616_v34 = vpop.f32.mrf.mxu1 }
 0x14c   :  { %v365_v38 = vpop.f32.mrf.mxu1 }
 0x14e   :  { %v595_v35 = vpop.f32.mrf.mxu0  ;;  %v630_v45 = vpop.f32.mrf.mxu1 }
 0x14f   :  { %v208_v37 = vadd.f32 %v602_v32, %v595_v35 }
 0x150   :  { %v110_v36 = vpop.f32.mrf.mxu0  ;;  %v529_v52 = vpop.f32.mrf.mxu1 }
 0x151   :  { %v202_v40 = vadd.f32 %v201_v33, %v110_v36 }
 0x152   :  { %v609_v39 = vpop.f32.mrf.mxu0 }
 0x153   :  { %v291_v41 = vadd.f32 %v609_v39, %v208_v37 }
 0x154   :  { %v283_v42 = vpop.f32.mrf.mxu0 }
 0x155   :  { %v284_v43 = vadd.f32 %v283_v42, %v202_v40  ;;  %v374_v44 = vadd.f32 %v616_v34, %v291_v41 }
 0x156   :  { %v623_v46 = vpop.f32.mrf.mxu0 }
 0x157   :  { %v457_v47 = vadd.f32 %v623_v46, %v374_v44  ;;  %v366_v48 = vadd.f32 %v365_v38, %v284_v43 }
 0x158   :  { %v450_v49 = vpop.f32.mrf.mxu0 }
 0x159   :  { %v536_v50 = vadd.f32 %v630_v45, %v457_v47  ;;  %v451_v51 = vadd.f32 %v450_v49, %v366_v48 }
 0x15b   :  { %540 = vst [vmem:[#allocation2 + $0x8] sm:$0xff] %v536_v50  ;;  %v530_v53 = vadd.f32 %v529_v52, %v451_v51 }
 0x15d   :  { %539 = vst [vmem:[#allocation2] sm:$0xff] %v530_v53 }
 0x15e   :  { %648 = shalt.err (!%p645_p4)
}
 0x15f   :  { %s662_s18 = smov 128   ;;  %s663_s19 = smov 8  }
 0x160   :  { %552 = dma.vmem_to_hbm [thread:$0]  %s547_s1, 256, %s704_s2, [#allocation3], %s662_s18, %s662_s18, %s663_s19  }
 0x161   :  { %657 = dma.done.wait [#allocation3], 256  }
 0x162   :  { %658 = vsyncadd [#allocation3], 4294967040 }
 0x163   :  { %556 = vsyncpa [#allocation3], 1 }

</bundles_post_ra>
